<compile_context>
chip_gen: v6e
topology: v6e:2x2x1
jax: 0.10.0
libtpu: 0.0.40
codegen_flags: <defaults>
</compile_context>

<pallas_src>
import math

import jax
import jax.numpy as jnp
from jax import lax
from jax.experimental import pallas as pl
from jax.experimental.pallas import tpu as pltpu

HIDDEN = 32          # hidden_dim
QKV = 32             # qkv_dim
HEADS = 4            # num_heads
HEAD_DIM = QKV // HEADS
SEQ = 16
BATCH = 2


def _phi(t):
    # TODO(synk): `self.lka` is an injected module whose definition is not part
    # of the reference source; we stand in the standard parameter-free
    # ELU(x) + 1 positive feature map used for linear (kernelized) attention.
    return jnp.where(t > 0, t + 1.0, jnp.exp(t))


def _div(a, d):
    """Integer divide of a jnp int array by a positive Python constant."""
    if d & (d - 1) == 0:
        return a >> (d.bit_length() - 1)
    return a // d


def _mod(a, d):
    """Integer remainder of a non-negative jnp int array by a Python constant."""
    if d & (d - 1) == 0:
        return a & (d - 1)
    return a % d


def _make_kernel(batch, seq, hidden, qkv_dim, head_dim):
    """Single-shot kernel over the whole (batch*seq, hidden) problem."""
    rows = batch * seq

    def kernel(xm_ref, wb_ref, out_ref):
        xm = xm_ref[...]                      # (B*S, 2*HIDDEN): [x | mask bcast]
        wb = wb_ref[...]                      # (HIDDEN+1, 3*QKV+HIDDEN)

        x = xm[:, :hidden]                    # (B*S, HIDDEN)
        mask = xm[:, hidden:hidden + 1]       # (B*S, 1)
        w = wb[:hidden, :]                    # (HIDDEN, 3*QKV+HIDDEN)
        b = wb[hidden:hidden + 1, :]          # (1,      3*QKV+HIDDEN)

        w_qkv = w[:, :3 * qkv_dim]
        b_qkv = b[:, :3 * qkv_dim]
        wo = w[:, 3 * qkv_dim:]               # (QKV, HIDDEN)  (HIDDEN == QKV)
        bo = b[:, 3 * qkv_dim:]               # (1, HIDDEN)

        # --- MXU push 1: fused q/k/v projection, one bias + mask epilogue. ---
        qkv = jnp.dot(x, w_qkv, preferred_element_type=jnp.float32) + b_qkv
        qkv = qkv * mask                      # padding mask over feature lanes

        q = _phi(qkv[:, :qkv_dim])                 # lka feature map
        k = _phi(qkv[:, qkv_dim:2 * qkv_dim])      # lka feature map
        v = qkv[:, 2 * qkv_dim:3 * qkv_dim]
        # NOTE: the 1/sqrt(head_dim) scale on q and k cancels exactly in
        # numerator/denominator and is intentionally omitted.

        # In-kernel coupling masks (no DMA'd constants):
        #   batch_blk[s, c]   = 1 iff row s and column-chunk c are the same
        #                           batch element.
        #   head_blk_bd[c, j] = 1 iff lane (c mod QKV) and lane j are in the
        #                           same attention head.
        rb = lax.broadcasted_iota(jnp.int32, (rows, batch * qkv_dim), 0)
        cb = lax.broadcasted_iota(jnp.int32, (rows, batch * qkv_dim), 1)
        batch_blk = (_div(rb, seq) == _div(cb, qkv_dim)).astype(jnp.float32)

        rh = lax.broadcasted_iota(jnp.int32, (batch * qkv_dim, qkv_dim), 0)
        ch = lax.broadcasted_iota(jnp.int32, (batch * qkv_dim, qkv_dim), 1)
        head_blk_bd = (_div(_mod(rh, qkv_dim), head_dim)
                       == _div(ch, head_dim)).astype(jnp.float32)

        # Block-structure q and k across the batch so both batch elements run
        # inside the same (wider) MXU pushes.  Cheap VPU masking on tiny vregs.
        k_bd = jnp.concatenate([k] * batch, axis=1) * batch_blk   # (B*S, B*QKV)
        q_bd = jnp.concatenate([q] * batch, axis=1) * batch_blk   # (B*S, B*QKV)
        ones_col = jnp.ones((rows, 1), jnp.float32)
        v_ext = jnp.concatenate([v, ones_col], axis=1)            # (B*S, QKV+1)

        # --- MXU push 2: per-batch K^T V and K-sum in one contraction. ---
        # ktv_ext[b*QKV + l, j] = sum_{s in batch b} k[s, l] * v_ext[s, j]
        #   columns [0, QKV) hold K^T V, column QKV holds sum_s k[s, l].
        ktv_ext = lax.dot_general(k_bd, v_ext, (((0,), (0,)), ((), ())),
                                  preferred_element_type=jnp.float32)

        ktv_blk = ktv_ext[:, :qkv_dim] * head_blk_bd              # (B*QKV, QKV)
        den_rhs = ktv_ext[:, qkv_dim:qkv_dim + 1] * head_blk_bd   # (B*QKV, QKV)
        rhs = jnp.concatenate([ktv_blk, den_rhs], axis=1)         # (B*QKV, 2*QKV)

        # --- MXU push 3: fused numerator | denominator, both batches. ---
        nd = jnp.dot(q_bd, rhs, preferred_element_type=jnp.float32)  # (B*S, 2*QKV)
        num = nd[:, :qkv_dim]
        den = nd[:, qkv_dim:]

        # EUP approximate reciprocal + one Newton step (full f32 accuracy,
        # divide kept off the VPU).
        inv = pl.reciprocal(den, approx=True)
        inv = inv * (2.0 - den * inv)
        heads = num * inv                                         # (B*S, QKV)

        # --- MXU push 4: output projection, single full-ref store. ---
        out = jnp.dot(heads, wo, preferred_element_type=jnp.float32) + bo
        out_ref[...] = out.astype(out_ref.dtype)

    return kernel


def lka_attention(x, mask, params):
    B, S, Dm = x.shape
    wq, bq, wk, bk, wv, bv, wo, bo = params
    qkv_dim = wq.shape[1]
    hidden = wo.shape[1]
    head_dim = qkv_dim // HEADS

    # Pack weights + biases into ONE slab (works because HIDDEN == QKV;
    # otherwise Wo's rows would be zero-padded and the slab slicing revisited).
    assert wq.shape[0] == wo.shape[0], "packing assumes HIDDEN == QKV"
    w_packed = jnp.concatenate([wq, wk, wv, wo], axis=1)        # (HIDDEN, 3*QKV+HIDDEN)
    b_packed = jnp.concatenate([bq, bk, bv, bo], axis=1)        # (1,      3*QKV+HIDDEN)
    wb_packed = jnp.concatenate([w_packed, b_packed], axis=0)   # (HIDDEN+1, ...)

    # Pack activations + padding mask into ONE lane-dense slab.
    x2 = x.reshape(B * S, Dm)
    mask_b = jnp.broadcast_to(mask.reshape(B * S, 1), (B * S, Dm))
    xm_packed = jnp.concatenate([x2, mask_b], axis=1)           # (B*S, 2*HIDDEN)

    # Advisory cost estimate so XLA can schedule around the tiny custom call.
    flops = (2 * B * S * Dm * 3 * qkv_dim                      # qkv projection
             + 2 * B * S * B * qkv_dim * (qkv_dim + 1)         # K^T[V|1]
             + 2 * B * S * B * qkv_dim * 2 * qkv_dim           # num|den
             + 2 * B * S * qkv_dim * hidden)                   # output proj
    transcendentals = 3 * B * S * qkv_dim                      # 2x exp + recip
    bytes_accessed = 4 * (xm_packed.size + wb_packed.size + B * S * hidden)

    out2 = pl.pallas_call(
        _make_kernel(B, S, Dm, qkv_dim, head_dim),
        out_shape=jax.ShapeDtypeStruct((B * S, hidden), jnp.float32),
        in_specs=[pl.BlockSpec(memory_space=pltpu.MemorySpace.VMEM),
                  pl.BlockSpec(memory_space=pltpu.MemorySpace.VMEM)],
        out_specs=pl.BlockSpec(memory_space=pltpu.MemorySpace.VMEM),
        cost_estimate=pl.CostEstimate(flops=flops,
                                      transcendentals=transcendentals,
                                      bytes_accessed=bytes_accessed),
    )(xm_packed, wb_packed)

    return out2.reshape(B, S, hidden)


def lka_attention_reference(x, mask, params):
    """Pure-JAX mirror of the PyTorch forward, for verification."""
    wq, bq, wk, bk, wv, bv, wo, bo = params
    B, S, _ = x.shape
    q = (x @ wq + bq) * mask
    k = (x @ wk + bk) * mask
    v = (x @ wv + bv) * mask

    def split(t):  # (B, S, QKV) -> (B, H, S, Dh)
        return t.reshape(B, S, HEADS, HEAD_DIM).transpose(0, 2, 1, 3)

    q, k, v = split(q), split(k), split(v)
    q = _phi(q) / math.sqrt(HEAD_DIM)
    k = _phi(k) / math.sqrt(HEAD_DIM)

    kv = jnp.einsum('bhsd,bhse->bhde', k, v)            # sum over seq of outer prods
    num = jnp.einsum('bhsd,bhde->bhse', q, kv)
    den = jnp.einsum('bhsd,bhd->bhs', q, k.sum(axis=2))[..., None]
    out = num / den                                      # (B, H, S, Dh)
    out = out.transpose(0, 2, 1, 3).reshape(B, S, QKV)
    return out @ wo + bo


if __name__ == "__main__":
    key = jax.random.PRNGKey(0)
    keys = jax.random.split(key, 12)

    x = jax.random.normal(keys[0], (BATCH, SEQ, HIDDEN), dtype=jnp.float32)
    mask = (jax.random.uniform(keys[1], (BATCH, SEQ, 1)) > 0.2).astype(jnp.float32)

    def init_w(k, fan_in, fan_out):
        bound = 1.0 / math.sqrt(fan_in)
        return jax.random.uniform(k, (fan_in, fan_out), jnp.float32, -bound, bound)

    def init_b(k, fan_in, fan_out):
        bound = 1.0 / math.sqrt(fan_in)
        return jax.random.uniform(k, (1, fan_out), jnp.float32, -bound, bound)

    params = (
        init_w(keys[2], HIDDEN, QKV), init_b(keys[3], HIDDEN, QKV),   # q
        init_w(keys[4], HIDDEN, QKV), init_b(keys[5], HIDDEN, QKV),   # k
        init_w(keys[6], HIDDEN, QKV), init_b(keys[7], HIDDEN, QKV),   # v
        init_w(keys[8], QKV, HIDDEN), init_b(keys[9], QKV, HIDDEN),   # lin
    )

    out = lka_attention(x, mask, params)
    out = jax.block_until_ready(out)

    ref = lka_attention_reference(x, mask, params)
    assert out.shape == (BATCH, SEQ, HIDDEN)
    # Tight tolerance restored: the Newton-refined approximate reciprocal is
    # ~f32 accurate, so restructured accumulation order is the only delta.
    assert jnp.allclose(out, ref, atol=1e-4, rtol=1e-4), "mismatch vs JAX reference"

    print("KERNEL_OK")
</pallas_src>

<mosaic_0001>
module attributes {stable_mosaic.version = 11 : i64} {
  func.func @kernel(%arg0: memref<32x64xf32, #tpu.memory_space<vmem>>, %arg1: memref<33x128xf32, #tpu.memory_space<vmem>>, %arg2: memref<32x32xf32, #tpu.memory_space<vmem>>) attributes {dimension_semantics = [], scalar_prefetch = 0 : i64, scratch_operands = 0 : i64, tpu.core_type = #tpu.core_type<tc>} {
    %c0 = arith.constant 0 : index
    %c0_0 = arith.constant 0 : index
    %0 = vector.load %arg0[%c0, %c0_0] : memref<32x64xf32, #tpu.memory_space<vmem>>, vector<32x64xf32>
    %c0_1 = arith.constant 0 : index
    %c0_2 = arith.constant 0 : index
    %1 = vector.load %arg1[%c0_1, %c0_2] : memref<33x128xf32, #tpu.memory_space<vmem>>, vector<33x128xf32>
    %2 = vector.extract_strided_slice %0 {offsets = [0, 0], sizes = [32, 32], strides = [1, 1]} : vector<32x64xf32> to vector<32x32xf32>
    %3 = vector.extract_strided_slice %0 {offsets = [0, 32], sizes = [32, 1], strides = [1, 1]} : vector<32x64xf32> to vector<32x1xf32>
    %4 = vector.extract_strided_slice %1 {offsets = [0, 0], sizes = [32, 128], strides = [1, 1]} : vector<33x128xf32> to vector<32x128xf32>
    %5 = vector.extract_strided_slice %1 {offsets = [32, 0], sizes = [1, 128], strides = [1, 1]} : vector<33x128xf32> to vector<1x128xf32>
    %6 = vector.extract_strided_slice %4 {offsets = [0, 0], sizes = [32, 96], strides = [1, 1]} : vector<32x128xf32> to vector<32x96xf32>
    %7 = vector.extract_strided_slice %5 {offsets = [0, 0], sizes = [1, 96], strides = [1, 1]} : vector<1x128xf32> to vector<1x96xf32>
    %8 = vector.extract_strided_slice %4 {offsets = [0, 96], sizes = [32, 32], strides = [1, 1]} : vector<32x128xf32> to vector<32x32xf32>
    %9 = vector.extract_strided_slice %5 {offsets = [0, 96], sizes = [1, 32], strides = [1, 1]} : vector<1x128xf32> to vector<1x32xf32>
    %cst = arith.constant dense<0.000000e+00> : vector<32x96xf32>
    %10 = tpu.matmul %2, %6, %cst {dimension_numbers = #tpu.dot_dimension_numbers<[1], [0], [0], [1], [0, 0, 1, 1], [], []>} : vector<32x32xf32>, vector<32x96xf32>, vector<32x96xf32> -> vector<32x96xf32>
    %11 = vector.broadcast %7 : vector<1x96xf32> to vector<32x96xf32>
    %12 = arith.addf %10, %11 : vector<32x96xf32>
    %13 = vector.broadcast %3 : vector<32x1xf32> to vector<32x96xf32>
    %14 = arith.mulf %12, %13 : vector<32x96xf32>
    %15 = vector.extract_strided_slice %14 {offsets = [0, 0], sizes = [32, 32], strides = [1, 1]} : vector<32x96xf32> to vector<32x32xf32>
    %cst_3 = arith.constant 0.000000e+00 : f32
    %16 = vector.broadcast %cst_3 : f32 to vector<32x32xf32>
    %17 = arith.cmpf ogt, %15, %16 : vector<32x32xf32>
    %cst_4 = arith.constant 1.000000e+00 : f32
    %18 = vector.broadcast %cst_4 : f32 to vector<32x32xf32>
    %19 = arith.addf %15, %18 : vector<32x32xf32>
    %20 = math.exp %15 : vector<32x32xf32>
    %21 = arith.select %17, %19, %20 : vector<32x32xi1>, vector<32x32xf32>
    %22 = vector.extract_strided_slice %14 {offsets = [0, 32], sizes = [32, 32], strides = [1, 1]} : vector<32x96xf32> to vector<32x32xf32>
    %cst_5 = arith.constant 0.000000e+00 : f32
    %23 = vector.broadcast %cst_5 : f32 to vector<32x32xf32>
    %24 = arith.cmpf ogt, %22, %23 : vector<32x32xf32>
    %cst_6 = arith.constant 1.000000e+00 : f32
    %25 = vector.broadcast %cst_6 : f32 to vector<32x32xf32>
    %26 = arith.addf %22, %25 : vector<32x32xf32>
    %27 = math.exp %22 : vector<32x32xf32>
    %28 = arith.select %24, %26, %27 : vector<32x32xi1>, vector<32x32xf32>
    %29 = vector.extract_strided_slice %14 {offsets = [0, 64], sizes = [32, 32], strides = [1, 1]} : vector<32x96xf32> to vector<32x32xf32>
    %30 = tpu.iota {dimensions = array<i32: 0>} : vector<32x64xi32>
    %31 = tpu.iota {dimensions = array<i32: 1>} : vector<32x64xi32>
    %c4_i32 = arith.constant 4 : i32
    %32 = vector.broadcast %c4_i32 : i32 to vector<32x64xi32>
    %33 = arith.shrsi %30, %32 : vector<32x64xi32>
    %c5_i32 = arith.constant 5 : i32
    %34 = vector.broadcast %c5_i32 : i32 to vector<32x64xi32>
    %35 = arith.shrsi %31, %34 : vector<32x64xi32>
    %36 = arith.cmpi eq, %33, %35 : vector<32x64xi32>
    %37 = arith.extui %36 : vector<32x64xi1> to vector<32x64xi32>
    %38 = arith.sitofp %37 : vector<32x64xi32> to vector<32x64xf32>
    %39 = tpu.iota {dimensions = array<i32: 0>} : vector<64x32xi32>
    %40 = tpu.iota {dimensions = array<i32: 1>} : vector<64x32xi32>
    %c31_i32 = arith.constant 31 : i32
    %41 = vector.broadcast %c31_i32 : i32 to vector<64x32xi32>
    %42 = arith.andi %39, %41 : vector<64x32xi32>
    %c3_i32 = arith.constant 3 : i32
    %43 = vector.broadcast %c3_i32 : i32 to vector<64x32xi32>
    %44 = arith.shrsi %42, %43 : vector<64x32xi32>
    %c3_i32_7 = arith.constant 3 : i32
    %45 = vector.broadcast %c3_i32_7 : i32 to vector<64x32xi32>
    %46 = arith.shrsi %40, %45 : vector<64x32xi32>
    %47 = arith.cmpi eq, %44, %46 : vector<64x32xi32>
    %48 = arith.extui %47 : vector<64x32xi1> to vector<64x32xi32>
    %49 = arith.sitofp %48 : vector<64x32xi32> to vector<64x32xf32>
    %50 = tpu.concatenate %28, %28 in 1 : vector<32x32xf32>, vector<32x32xf32> -> vector<32x64xf32>
    %51 = arith.mulf %50, %38 : vector<32x64xf32>
    %52 = tpu.concatenate %21, %21 in 1 : vector<32x32xf32>, vector<32x32xf32> -> vector<32x64xf32>
    %53 = arith.mulf %52, %38 : vector<32x64xf32>
    %cst_8 = arith.constant 1.000000e+00 : f32
    %54 = vector.broadcast %cst_8 : f32 to vector<32x1xf32>
    %55 = tpu.concatenate %29, %54 in 1 : vector<32x32xf32>, vector<32x1xf32> -> vector<32x33xf32>
    %cst_9 = arith.constant dense<0.000000e+00> : vector<64x33xf32>
    %56 = tpu.matmul %51, %55, %cst_9 {dimension_numbers = #tpu.dot_dimension_numbers<[0], [0], [1], [1], [0, 1, 1, 1], [], []>} : vector<32x64xf32>, vector<32x33xf32>, vector<64x33xf32> -> vector<64x33xf32>
    %57 = vector.extract_strided_slice %56 {offsets = [0, 0], sizes = [64, 32], strides = [1, 1]} : vector<64x33xf32> to vector<64x32xf32>
    %58 = arith.mulf %57, %49 : vector<64x32xf32>
    %59 = vector.extract_strided_slice %56 {offsets = [0, 32], sizes = [64, 1], strides = [1, 1]} : vector<64x33xf32> to vector<64x1xf32>
    %60 = vector.broadcast %59 : vector<64x1xf32> to vector<64x32xf32>
    %61 = arith.mulf %60, %49 : vector<64x32xf32>
    %62 = tpu.concatenate %58, %61 in 1 : vector<64x32xf32>, vector<64x32xf32> -> vector<64x64xf32>
    %cst_10 = arith.constant dense<0.000000e+00> : vector<32x64xf32>
    %63 = tpu.matmul %53, %62, %cst_10 {dimension_numbers = #tpu.dot_dimension_numbers<[1], [0], [0], [1], [0, 0, 1, 1], [], []>} : vector<32x64xf32>, vector<64x64xf32>, vector<32x64xf32> -> vector<32x64xf32>
    %64 = vector.extract_strided_slice %63 {offsets = [0, 0], sizes = [32, 32], strides = [1, 1]} : vector<32x64xf32> to vector<32x32xf32>
    %65 = vector.extract_strided_slice %63 {offsets = [0, 32], sizes = [32, 32], strides = [1, 1]} : vector<32x64xf32> to vector<32x32xf32>
    %66 = tpu.reciprocal %65 {approx = true} : vector<32x32xf32> -> vector<32x32xf32>
    %67 = arith.mulf %65, %66 : vector<32x32xf32>
    %cst_11 = arith.constant 2.000000e+00 : f32
    %68 = vector.broadcast %cst_11 : f32 to vector<32x32xf32>
    %69 = arith.subf %68, %67 : vector<32x32xf32>
    %70 = arith.mulf %66, %69 : vector<32x32xf32>
    %71 = arith.mulf %64, %70 : vector<32x32xf32>
    %cst_12 = arith.constant dense<0.000000e+00> : vector<32x32xf32>
    %72 = tpu.matmul %71, %8, %cst_12 {dimension_numbers = #tpu.dot_dimension_numbers<[1], [0], [0], [1], [0, 0, 1, 1], [], []>} : vector<32x32xf32>, vector<32x32xf32>, vector<32x32xf32> -> vector<32x32xf32>
    %73 = vector.broadcast %9 : vector<1x32xf32> to vector<32x32xf32>
    %74 = arith.addf %72, %73 : vector<32x32xf32>
    %c0_13 = arith.constant 0 : index
    %c0_14 = arith.constant 0 : index
    %75 = vector.load %arg2[%c0_13, %c0_14] : memref<32x32xf32, #tpu.memory_space<vmem>>, vector<32x32xf32>
    tpu.vector_store %arg2[%c0_13, %c0_14], %74 {strides = array<i32>} : memref<32x32xf32, #tpu.memory_space<vmem>>, vector<32x32xf32>,
    return
  }
}

</mosaic_0001>

<bundles_post_ra>
// kernel: tpu_custom_call.1
= control target key start
LH: loop header
LB: loop body
LE: loop exit
PB: predicated region body
PF: predicated region fallthrough
CT: control target
= control target key end

     0   :  { %7 = vsyncpa [#allocation3], 0  ;;  %s1361_s0 = inlined_call_operand.hbm [shape: f32[32,64], index: 0, kind: input, shape index: {}]   ;;  %s1362_s1 = inlined_call_operand.hbm [shape: f32[33,128], index: 1, kind: input, shape index: {}]   ;;  %s1363_s2 = inlined_call_operand.hbm [shape: f32[32,32], index: 2, kind: output, shape index: {}]  }
   0x1   :  { %8 = vsyncpa [#allocation6], 0 }
   0x2   :  { %9 = vsyncpa [#allocation4], 0  ;;  %s1091_s9 = smov [#allocation2]  }
   0x3   :  { %s15_s10 = sshll.u32 %s1091_s9, 4  ;;  %s16_s10 = int_to_ptr.vmem [resolvable:$true] %s15_s10 }
   0x4   :  { %s1033_s11 = scalar_lea.vmem %s16_s10, 512  ;;  %p1038_p1 = scmp.lt.s32.totalorder %s16_s10, %s16_s10 }
   0x5   :  { %p1034_p0 = scmp.ne.s32.totalorder %s16_s10, %s1033_s11  ;;  %p1039_p2 = scmp.lt.s32.totalorder %s1033_s11, %s1033_s11 }
   0x7   :  { %p1040_p3 = por %p1039_p2, %p1038_p1 }
   0x9   :  { %p1041_p4 = pnand %p1040_p3, %p1034_p0 }
   0xb   :  { %1044 = shalt.err (!%p1041_p4)
}
   0xc   :  { %s1092_s12 = smov 128   ;;  %s1093_s13 = smov 8  }
   0xd   :  { %21 = dma.hbm_to_vmem [thread:$0]  %s1361_s0, 512, %s16_s10, [#allocation3], %s1092_s12, %s1092_s12, %s1093_s13  }
   0xe   :  { %s1094_s16 = smov [#allocation5]  }
   0xf   :  { %s27_s17 = sshll.u32 %s1094_s16, 4  ;;  %s28_s17 = int_to_ptr.vmem [resolvable:$true] %s27_s17 }
  0x10   :  { %s1053_s18 = scalar_lea.vmem %s28_s17, 640  ;;  %p1058_p6 = scmp.lt.s32.totalorder %s28_s17, %s28_s17 }
  0x11   :  { %p1054_p5 = scmp.ne.s32.totalorder %s28_s17, %s1053_s18  ;;  %p1059_p7 = scmp.lt.s32.totalorder %s1053_s18, %s1053_s18 }
  0x13   :  { %p1060_p8 = por %p1059_p7, %p1058_p6 }
  0x15   :  { %p1061_p9 = pnand %p1060_p8, %p1054_p5 }
  0x17   :  { %1064 = shalt.err (!%p1061_p9)
}
  0x18   :  { %33 = dma.hbm_to_vmem [thread:$0]  %s1362_s1, 640, %s28_s17, [#allocation6], %s1092_s12, %s1092_s12, %s1093_s13  }
  0x19   :  { %1085 = dma.done.wait [#allocation3], 512  }
  0x1a   :  { %1086 = vsyncadd [#allocation3], 4294966784 }
  0x1b   :  { %1087 = dma.done.wait [#allocation6], 640  }
  0x1c   :  { %1088 = vsyncadd [#allocation6], 4294966656  ;;  %v1095_v0 = vmov 32   ;;  %vm53_vm0 = vcmask 261120   ;;  %v1128_v1 = vld [vmem:[#allocation5 + $0x18] sm:$0xff]  ;;  %v1130_v2 = vld [vmem:[#allocation5 + $0x10] sm:$0xff]  ;;  %v191_v42 = vlaneseq }
  0x1d   :  { %1007 = vset.pattern.permute.xlu0 %v1095_v0  ;;  %1008 = vset.pattern.permute.xlu1 %v1095_v0  ;;  %v40_v3 = vld [vmem:[#allocation2] sm:$0xff]  ;;  %v1134_v4 = vld [vmem:[#allocation5 + $0x8] sm:$0xff]  ;;  %v42_v5 = vld [vmem:[#allocation2 + $0x10] sm:$0xff]  ;;  %s1096_s0 = smov 96   ;;  %s1097_s1 = smov 64   ;;  %v1098_v51 = vmov 0.0  }
  0x1e   :  { %927 = vmatprep.subr.mxu0 %v1128_v1  ;;  %935 = vmatprep.mubr.msk.f32.mxu0 %vm53_vm0, %v40_v3  ;;  %v1139_v6 = vld [vmem:[#allocation5] sm:$0xff]  ;;  %v41_v7 = vld [vmem:[#allocation2 + $0x8] sm:$0xff]  ;;  %v43_v8 = vld [vmem:[#allocation2 + $0x18] sm:$0xff]  ;;  %v1170_v43 = vshrl.u32 %v191_v42, 7  ;;  %v1172_v44 = vand.u32 127, %v191_v42  ;;  %s1099_s21 = smov 32  }
  0x1f   :  { %928 = vmatpush3.msra.mxu0 %v1128_v1  ;;  %152 = vperm.xlu0 %1007, %v40_v3   ;;  %v1148_v10 = vld [vmem:[#allocation5 + $0x20] ss:$0 sm:$0xff]  ;;  %s1100_s22 = smov [#allocation7]  }
  0x20   :  { %929 = vmatprep.subr.mxu0 %v1130_v2  ;;  %160 = vperm.xlu1 %1008, %v42_v5   ;;  %v1175_v45 = vadd.s32 8, %v1170_v43  ;;  %v198_v46 = vshra.s32 %v1170_v43, 4  ;;  %v202_v47 = vshra.s32 %v1172_v44, 5  ;;  %v1181_v49 = vadd.s32 16, %v1170_v43  ;;  %s841_s23 = sshll.u32 %s1100_s22, 4  ;;  %s842_s23 = int_to_ptr.vmem [resolvable:$true] %s841_s23 }
  0x21   :  { %930 = vmatpush3.msra.mxu0 %v1130_v2  ;;  %v1187_v54 = vadd.s32 24, %v1170_v43  ;;  %s1065_s24 = scalar_lea.vmem %s842_s23, 512  ;;  %p1070_p11 = scmp.lt.s32.totalorder %s842_s23, %s842_s23 }
  0x22   :  { %931 = vmatprep.subr.mxu0 %v1134_v4  ;;  %v199_v48 = vshra.s32 %v1175_v45, 4  ;;  %vm203_vm5 = vcmp.eq.s32.totalorder %v198_v46, %v202_v47  ;;  %v200_v55 = vshra.s32 %v1181_v49, 4  ;;  %p1066_p10 = scmp.ne.s32.totalorder %s842_s23, %s1065_s24  ;;  %p1071_p12 = scmp.lt.s32.totalorder %s1065_s24, %s1065_s24 }
  0x23   :  { %932 = vmatpush3.msra.mxu0 %v1134_v4  ;;  %156 = vperm.xlu0 %1007, %v41_v7   ;;  %v1184_v52 = vsel %vm203_vm5, 1.0, %v1098_v51  ;;  %v201_v61 = vshra.s32 %v1187_v54, 4  ;;  %v222_v42 = vand.u32 31, %v1187_v54 }
  0x24   :  { %933 = vmatprep.subr.mxu0 %v1139_v6  ;;  %164 = vperm.xlu1 %1008, %v43_v8   ;;  %vm204_vm6 = vcmp.eq.s32.totalorder %v199_v48, %v202_v47  ;;  %vm205_vm7 = vcmp.eq.s32.totalorder %v200_v55, %v202_v47  ;;  %v235_v48 = vshra.s32 %v1172_v44, 3  ;;  %p1072_p13 = por %p1071_p12, %p1070_p11 }
  0x25   :  { %934 = vmatpush3.msra.mxu0 %v1139_v6  ;;  %v1194_v59 = vsel %vm204_vm6, 1.0, %v1098_v51  ;;  %v1201_v3 = vsel %vm205_vm7, 1.0, %v1098_v51  ;;  %vm206_vm8 = vcmp.eq.s32.totalorder %v201_v61, %v202_v47 }
  0x26   :  { %936 = vmatmul.mubr.msk.f32.vlgmr.msra.gmra.mxu0 %vm53_vm0, %v41_v7  ;;  %p1073_p0 = pnand %p1072_p13, %p1066_p10 }
  0x27   :  { %938 = vmatprep.mubr.msk.f32.mxu0 %vm53_vm0, %v42_v5 }
  0x2a   :  { %939 = vmatmul.mubr.msk.f32.gmra.mxu0 %vm53_vm0, %v43_v8 }
  0x9a   :  { %v153_v9 = vpop.permute.xlu0 %152 }
  0x9b   :  { %v161_v11 = vpop.permute.xlu1 %160 }
  0x9e   :  { %v157_v13 = vpop.permute.xlu0 %156 }
  0x9f   :  { %v165_v19 = vpop.permute.xlu1 %164 }
  0xe6   :  { %v937_v12 = vpop.f32.mrf.mxu0 }
  0xe7   :  { %v138_v14 = vadd.f32 %v937_v12, %v1148_v10 }
  0xe8   :  { %v132_v15 = vpop.f32.mrf.mxu0 }
  0xe9   :  { %v168_v16 = vmul.f32 %v157_v13, %v138_v14  ;;  %v133_v17 = vadd.f32 %v1148_v10, %v132_v15 }
  0xea   :  { %v940_v18 = vpop.f32.mrf.mxu0 }
  0xeb   :  { %v181_v20 = vmul.f32 1.442695, %v168_v16  ;;  %v167_v21 = vmul.f32 %v153_v9, %v133_v17  ;;  %v148_v22 = vadd.f32 %v940_v18, %v1148_v10  ;;  %v176_v30 = vadd.f32 1.0, %v168_v16 }
  0xec   :  { %v142_v23 = vpop.f32.mrf.mxu0  ;;  %vm172_vm1 = vcmp.gt.f32.partialorder %v168_v16, 0.0 }
  0xed   :  { %1009 = vpow2.f32 %v181_v20  ;;  %v179_v24 = vmul.f32 1.442695, %v167_v21  ;;  %v170_v25 = vmul.f32 %v165_v19, %v148_v22  ;;  %v143_v26 = vadd.f32 %v1148_v10, %v142_v23 }
  0xee   :  { %v175_v33 = vadd.f32 1.0, %v167_v21  ;;  %vm171_vm2 = vcmp.gt.f32.partialorder %v167_v21, 0.0 }
  0xef   :  { %1011 = vpow2.f32 %v179_v24  ;;  %v185_v27 = vmul.f32 1.442695, %v170_v25  ;;  %v169_v28 = vmul.f32 %v161_v11, %v143_v26  ;;  %v178_v36 = vadd.f32 1.0, %v170_v25 }
  0xf0   :  { %vm174_vm3 = vcmp.gt.f32.partialorder %v170_v25, 0.0  ;;  %v1208_v11 = vsel %vm206_vm8, 1.0, %v1098_v51 }
  0xf1   :  { %1013 = vpow2.f32 %v185_v27  ;;  %v183_v29 = vmul.f32 1.442695, %v169_v28  ;;  %v177_v39 = vadd.f32 1.0, %v169_v28  ;;  %vm173_vm4 = vcmp.gt.f32.partialorder %v169_v28, 0.0 }
  0xf3   :  { %1015 = vpow2.f32 %v183_v29 }
  0xfa   :  { %v1010_v31 = vpop.eup %1009 }
  0xfb   :  { %v1154_v32 = vsel %vm172_vm1, %v176_v30, %v1010_v31 }
  0xfc   :  { %v1012_v34 = vpop.eup %1011  ;;  %266 = vrot.lane.b32.xlu1 %v1154_v32, %s1096_s0 }
  0xfd   :  { %v1158_v35 = vsel %vm171_vm2, %v175_v33, %v1012_v34  ;;  %vm581_vm2 = vcmask 523264  }
  0xfe   :  { %v1014_v37 = vpop.eup %1013  ;;  %264 = vrot.lane.b32.xlu0 %v1158_v35, %s1096_s0 }
  0xff   :  { %v1162_v38 = vsel %vm174_vm3, %v178_v36, %v1014_v37  ;;  %v216_v37 = vadd.s32 40, %v1170_v43 }
 0x100   :  { %v1016_v40 = vpop.eup %1015  ;;  %270 = vrot.lane.b32.xlu1 %v1162_v38, %s1096_s0 }
 0x101   :  { %v1166_v41 = vsel %vm173_vm4, %v177_v39, %v1016_v40  ;;  %v224_v39 = vand.u32 31, %v216_v37  ;;  %v215_v40 = vadd.s32 32, %v1170_v43 }
 0x102   :  { %268 = vrot.lane.b32.xlu0 %v1166_v41, %s1096_s0 }
 0x103   :  { %v232_v46 = vshra.s32 %v224_v39, 3  ;;  %v223_v47 = vand.u32 31, %v215_v40 }
 0x104   :  { %312 = vrot.lane.b32.xlu1 %v169_v28, %s1097_s1 }
 0x105   :  { %vm241_vm9 = vcmp.eq.s32.totalorder %v232_v46, %v235_v48  ;;  %v231_v55 = vshra.s32 %v223_v47, 3 }
 0x106   :  { %314 = vrot.lane.b32.xlu0 %v170_v25, %s1097_s1 }
 0x107   :  { %vm240_vm11 = vcmp.eq.s32.totalorder %v231_v55, %v235_v48 }
 0x108   :  { %308 = vrot.lane.b32.xlu1 %v167_v21, %s1097_s1  ;;  %v1261_v44 = vsel %vm240_vm11, 1.0, %v1098_v51 }
 0x10a   :  { %310 = vrot.lane.b32.xlu0 %v168_v16, %s1097_s1 }
 0x16e   :  { %v267_v50 = vpop.permute.xlu1 %266 }
 0x16f   :  { %v277_v60 = vsel %vm53_vm0, %v267_v50, %v1154_v32 }
 0x170   :  { %v265_v53 = vpop.permute.xlu0 %264  ;;  %v281_v63 = vmul.f32 %v1194_v59, %v277_v60 }
 0x171   :  { %v276_v56 = vsel %vm53_vm0, %v265_v53, %v1158_v35  ;;  %v230_v53 = vshra.s32 %v222_v42, 3 }
 0x172   :  { %v280_v57 = vmul.f32 %v1184_v52, %v276_v56  ;;  %v271_v58 = vpop.permute.xlu1 %270  ;;  %v1253_v56 = vsel %vm241_vm9, 1.0, %v1098_v51 }
 0x173   :  { %v279_v12 = vsel %vm53_vm0, %v271_v58, %v1162_v38  ;;  %vm239_vm10 = vcmp.eq.s32.totalorder %v230_v53, %v235_v48 }
 0x174   :  { %324 = vxpose.xlu0.b32.start [1/4] (short) (narrow) %v280_v57, 64  ;;  %v269_v62 = vpop.permute.xlu0 %268  ;;  %v283_v17 = vmul.f32 %v1208_v11, %v279_v12  ;;  %v1258_v54 = vsel %vm239_vm10, 1.0, %v1098_v51 }
 0x175   :  { %v278_v5 = vsel %vm53_vm0, %v269_v62, %v1166_v41 }
 0x176   :  { %v313_v0 = vpop.permute.xlu1 %312  ;;  %v282_v9 = vmul.f32 %v1201_v3, %v278_v5 }
 0x177   :  { %v322_v13 = vsel %vm53_vm0, %v313_v0, 1.0 }
 0x178   :  { %325 = vxpose.xlu0.b32.cont [2/4] (short) (narrow) %v281_v63, 64  ;;  %v315_v7 = vpop.permute.xlu0 %314  ;;  %v221_v63 = vand.u32 31, %v1181_v49  ;;  %v217_v49 = vadd.s32 48, %v1170_v43 }
 0x179   :  { %v323_v8 = vsel %vm53_vm0, %v315_v7, 1.0  ;;  %v220_v7 = vand.u32 31, %v1175_v45 }
 0x17a   :  { %941 = vmatprep.subr.mxu1 %v323_v8  ;;  %v309_v14 = vpop.permute.xlu1 %308  ;;  %v229_v5 = vshra.s32 %v221_v63, 3 }
 0x17b   :  { %942 = vmatpush3.msra.mxu1 %v323_v8  ;;  %v320_v18 = vsel %vm53_vm0, %v309_v14, 1.0  ;;  %v228_v12 = vshra.s32 %v220_v7, 3 }
 0x17c   :  { %326 = vxpose.xlu0.b32.cont [3/4] (short) (narrow) %v282_v9, 64  ;;  %943 = vmatprep.subr.mxu1 %v322_v13  ;;  %v311_v15 = vpop.permute.xlu0 %310  ;;  %v218_v9 = vadd.s32 56, %v1170_v43  ;;  %vm238_vm12 = vcmp.eq.s32.totalorder %v229_v5, %v235_v48 }
 0x17d   :  { %v321_v16 = vsel %vm53_vm0, %v311_v15, 1.0  ;;  %944 = vmatpush3.msra.mxu1 %v322_v13  ;;  %v1271_v13 = vsel %vm238_vm12, 1.0, %v1098_v51  ;;  %vm237_vm13 = vcmp.eq.s32.totalorder %v228_v12, %v235_v48 }
 0x17e   :  { %945 = vmatprep.subr.mxu1 %v321_v16  ;;  %v226_v15 = vand.u32 31, %v218_v9 }
 0x17f   :  { %946 = vmatpush3.msra.mxu1 %v321_v16 }
 0x180   :  { %327 = vxpose.xlu0.b32.end [4/4] (short) (narrow) %v283_v17, 64  ;;  %947 = vmatprep.subr.mxu1 %v320_v18  ;;  %v1277_v17 = vsel %vm237_vm13, 1.0, %v1098_v51 }
 0x181   :  { %948 = vmatpush3.msra.mxu1 %v320_v18  ;;  %v234_v18 = vshra.s32 %v226_v15, 3 }
 0x183   :  { %vm243_vm14 = vcmp.eq.s32.totalorder %v234_v18, %v235_v48 }
 0x1f0   :  { %v340_v19 = vpop.trf.xlu0 }
 0x1f1   :  { %949 = vmatprep.mubr.msk.f32.mxu1 %vm53_vm0, %v340_v19  ;;  %v225_v19 = vand.u32 31, %v217_v49 }
 0x1f4   :  { %v341_v20 = vpop.trf.xlu0 }
 0x1f5   :  { %950 = vmatmul.mubr.msk.f32.vlgmr.msra.gmra.mxu1 %vm53_vm0, %v341_v20 }
 0x1f8   :  { %v342_v21 = vpop.trf.xlu0 }
 0x1f9   :  { %952 = vmatprep.mubr.msk.f32.mxu1 %vm53_vm0, %v342_v21  ;;  %v233_v21 = vshra.s32 %v225_v19, 3 }
 0x1fb   :  { %vm242_vm15 = vcmp.eq.s32.totalorder %v233_v21, %v235_v48 }
 0x1fc   :  { %v343_v22 = vpop.trf.xlu0 }
 0x1fd   :  { %953 = vmatmul.mubr.msk.f32.gmra.mxu1 %vm53_vm0, %v343_v22  ;;  %v870_v22 = vsel %vm243_vm14, 1.0, %v1098_v51 }
 0x200   :  { %v344_v23 = vpop.trf.xlu0 }
 0x201   :  { %955 = vmatprep.mubr.msk.f32.mxu1 %vm53_vm0, %v344_v23 }
 0x204   :  { %v345_v24 = vpop.trf.xlu0 }
 0x205   :  { %956 = vmatmul.mubr.msk.f32.gmra.mxu1 %vm53_vm0, %v345_v24  ;;  %v219_v24 = vand.u32 31, %v1170_v43 }
 0x207   :  { %v227_v37 = vshra.s32 %v219_v24, 3 }
 0x208   :  { %v346_v25 = vpop.trf.xlu0 }
 0x209   :  { %958 = vmatprep.mubr.msk.f32.mxu1 %vm53_vm0, %v346_v25  ;;  %v869_v25 = vsel %vm242_vm15, 1.0, %v1098_v51  ;;  %vm236_vm1 = vcmp.eq.s32.totalorder %v227_v37, %v235_v48 }
 0x20a   :  { %v863_v40 = vsel %vm236_vm1, 1.0, %v1098_v51 }
 0x20c   :  { %v347_v26 = vpop.trf.xlu0 }
 0x20d   :  { %959 = vmatmul.mubr.msk.f32.gmra.mxu1 %vm53_vm0, %v347_v26 }
 0x2b5   :  { %v1224_v27 = vpop.f32.mrf.mxu1 }
 0x2b7   :  { %v1226_v28 = vpop.f32.mrf.mxu1 }
 0x2bd   :  { %v1228_v29 = vpop.f32.mrf.mxu1 }
 0x2be   :  { %510 = vperm.xlu1 %1008, %v1228_v29  }
 0x2bf   :  { %v1231_v30 = vpop.f32.mrf.mxu1 }
 0x2c5   :  { %v1233_v31 = vpop.f32.mrf.mxu1 }
 0x2c6   :  { %520 = vperm.xlu1 %1008, %v1233_v31  }
 0x2c7   :  { %v1236_v33 = vpop.f32.mrf.mxu1 }
 0x2ca   :  { %515 = vperm.xlu1 %1008, %v1236_v33  }
 0x2cd   :  { %v1239_v34 = vpop.f32.mrf.mxu1 }
 0x2ce   :  { %530 = vperm.xlu1 %1008, %v1239_v34   ;;  %v492_v55 = vmul.f32 %v1239_v34, %v870_v22 }
 0x2cf   :  { %v1242_v36 = vpop.f32.mrf.mxu1 }
 0x2d2   :  { %525 = vperm.xlu1 %1008, %v1242_v36  }
 0x2d6   :  { %505 = vperm.xlu1 %1008, %v1231_v30  }
 0x2da   :  { %500 = vperm.xlu1 %1008, %v1224_v27  }
 0x2de   :  { %495 = vperm.xlu1 %1008, %v1226_v28  }
 0x339   :  { %v511_v50 = vpop.permute.xlu1 %510 }
 0x33a   :  { %v536_v61 = vmul.f32 %v1258_v54, %v511_v50 }
 0x341   :  { %v521_v57 = vpop.permute.xlu1 %520 }
 0x342   :  { %v538_v58 = vmul.f32 %v1253_v56, %v521_v57 }
 0x344   :  { %559 = vrot.lane.b32.xlu1 %v538_v58, %s1099_s21  ;;  %v490_v58 = vmul.f32 %v1233_v31, %v1253_v56  ;;  %v487_v31 = vmul.f32 %v1271_v13, %v1231_v30 }
 0x345   :  { %v516_v60 = vpop.permute.xlu1 %515 }
 0x346   :  { %v537_v62 = vmul.f32 %v1261_v44, %v516_v60 }
 0x348   :  { %557 = vrot.lane.b32.xlu0 %v537_v62, %s1099_s21  ;;  %555 = vrot.lane.b32.xlu1 %v536_v61, %s1099_s21 }
 0x349   :  { %v531_v0 = vpop.permute.xlu1 %530 }
 0x34a   :  { %v540_v23 = vmul.f32 %v870_v22, %v531_v0 }
 0x34d   :  { %v526_v8 = vpop.permute.xlu1 %525 }
 0x34e   :  { %v539_v26 = vmul.f32 %v869_v25, %v526_v8 }
 0x351   :  { %v506_v14 = vpop.permute.xlu1 %505 }
 0x352   :  { %v535_v16 = vmul.f32 %v1271_v13, %v506_v14 }
 0x354   :  { %553 = vrot.lane.b32.xlu1 %v535_v16, %s1099_s21 }
 0x355   :  { %v501_v45 = vpop.permute.xlu1 %500 }
 0x356   :  { %v534_v20 = vmul.f32 %v1277_v17, %v501_v45 }
 0x358   :  { %551 = vrot.lane.b32.xlu1 %v534_v20, %s1099_s21 }
 0x359   :  { %v496_v39 = vpop.permute.xlu1 %495 }
 0x35a   :  { %v533_v42 = vmul.f32 %v863_v40, %v496_v39 }
 0x35c   :  { %284 = vrot.lane.b32.xlu1 %v1158_v35, %s1099_s21 }
 0x360   :  { %563 = vrot.lane.b32.xlu1 %v540_v23, %s1099_s21 }
 0x364   :  { %561 = vrot.lane.b32.xlu1 %v539_v26, %s1099_s21 }
 0x368   :  { %286 = vrot.lane.b32.xlu1 %v1154_v32, %s1099_s21 }
 0x36c   :  { %549 = vrot.lane.b32.xlu1 %v533_v42, %s1099_s21 }
 0x370   :  { %288 = vrot.lane.b32.xlu1 %v1166_v41, %s1099_s21 }
 0x374   :  { %290 = vrot.lane.b32.xlu1 %v1162_v38, %s1099_s21 }
 0x378   :  { %725 = vrot.lane.b32.xlu1 %v1128_v1, %s1099_s21 }
 0x37c   :  { %723 = vrot.lane.b32.xlu1 %v1130_v2, %s1099_s21 }
 0x380   :  { %721 = vrot.lane.b32.xlu1 %v1134_v4, %s1099_s21  ;;  %v491_v4 = vmul.f32 %v869_v25, %v1242_v36  ;;  %v488_v36 = vmul.f32 %v1228_v29, %v1258_v54  ;;  %v485_v29 = vmul.f32 %v863_v40, %v1226_v28 }
 0x3b6   :  { %v560_v43 = vpop.permute.xlu1 %559 }
 0x3b7   :  { %v578_v34 = vsel %vm53_vm0, %v490_v58, %v560_v43 }
 0x3ba   :  { %v556_v51 = vpop.permute.xlu1 %555  ;;  %v558_v60 = vpop.permute.xlu0 %557 }
 0x3bb   :  { %v576_v56 = vsel %vm53_vm0, %v488_v36, %v556_v51 }
 0x3c6   :  { %v554_v46 = vpop.permute.xlu1 %553 }
 0x3ca   :  { %v552_v47 = vpop.permute.xlu1 %551 }
 0x3ce   :  { %v285_v48 = vpop.permute.xlu1 %284 }
 0x3cf   :  { %v296_v50 = vsel %vm53_vm0, %v1158_v35, %v285_v48 }
 0x3d0   :  { %v300_v53 = vmul.f32 %v1184_v52, %v296_v50  ;;  %v489_v52 = vmul.f32 %v1261_v44, %v1236_v33  ;;  %v486_v33 = vmul.f32 %v1224_v27, %v1277_v17  ;;  %v575_v44 = vsel %vm53_vm0, %v487_v31, %v554_v46 }
 0x3d2   :  { %977 = vmatprep.mubr.msk.f32.mxu0 %vm581_vm2, %v300_v53  ;;  %v564_v1 = vpop.permute.xlu1 %563  ;;  %v577_v62 = vsel %vm53_vm0, %v489_v52, %v558_v60  ;;  %v574_v30 = vsel %vm53_vm0, %v486_v33, %v552_v47 }
 0x3d3   :  { %v580_v2 = vsel %vm53_vm0, %v492_v55, %v564_v1 }
 0x3d4   :  { %961 = vmatprep.subr.mxu0 %v580_v2 }
 0x3d5   :  { %962 = vmatpush3.msra.mxu0 %v580_v2 }
 0x3d6   :  { %v562_v57 = vpop.permute.xlu1 %561 }
 0x3d7   :  { %v579_v35 = vsel %vm53_vm0, %v491_v4, %v562_v57 }
 0x3d8   :  { %963 = vmatprep.subr.mxu0 %v579_v35 }
 0x3d9   :  { %964 = vmatpush3.msra.mxu0 %v579_v35 }
 0x3da   :  { %v287_v61 = vpop.permute.xlu1 %286  ;;  %965 = vmatprep.subr.mxu0 %v578_v34 }
 0x3db   :  { %966 = vmatpush3.msra.mxu0 %v578_v34  ;;  %v297_v54 = vsel %vm53_vm0, %v1154_v32, %v287_v61 }
 0x3dc   :  { %967 = vmatprep.subr.mxu0 %v577_v62  ;;  %v301_v7 = vmul.f32 %v1194_v59, %v297_v54 }
 0x3dd   :  { %968 = vmatpush3.msra.mxu0 %v577_v62 }
 0x3de   :  { %v550_v63 = vpop.permute.xlu1 %549  ;;  %969 = vmatprep.subr.mxu0 %v576_v56 }
 0x3df   :  { %970 = vmatpush3.msra.mxu0 %v576_v56  ;;  %v573_v27 = vsel %vm53_vm0, %v485_v29, %v550_v63 }
 0x3e0   :  { %971 = vmatprep.subr.mxu0 %v575_v44 }
 0x3e1   :  { %972 = vmatpush3.msra.mxu0 %v575_v44 }
 0x3e2   :  { %v289_v0 = vpop.permute.xlu1 %288  ;;  %973 = vmatprep.subr.mxu0 %v574_v30 }
 0x3e3   :  { %v298_v5 = vsel %vm53_vm0, %v1166_v41, %v289_v0  ;;  %974 = vmatpush3.msra.mxu0 %v574_v30 }
 0x3e4   :  { %v302_v8 = vmul.f32 %v1201_v3, %v298_v5  ;;  %975 = vmatprep.subr.mxu0 %v573_v27 }
 0x3e5   :  { %976 = vmatpush3.msra.mxu0 %v573_v27 }
 0x3e6   :  { %v291_v28 = vpop.permute.xlu1 %290  ;;  %978 = vmatmul.mubr.msk.f32.vlgmr.msra.gmra.mxu0 %vm581_vm2, %v301_v7 }
 0x3e7   :  { %v299_v32 = vsel %vm53_vm0, %v1162_v38, %v291_v28  ;;  %980 = vmatprep.mubr.msk.f32.mxu0 %vm581_vm2, %v302_v8 }
 0x3e8   :  { %v303_v9 = vmul.f32 %v1208_v11, %v299_v32 }
 0x3ea   :  { %981 = vmatmul.mubr.msk.f32.gmra.mxu0 %vm581_vm2, %v303_v9  ;;  %v726_v41 = vpop.permute.xlu1 %725 }
 0x3eb   :  { %983 = vmatprep.subr.mxu1 %v726_v41 }
 0x3ec   :  { %984 = vmatpush3.msra.mxu1 %v726_v41 }
 0x3ee   :  { %v724_v59 = vpop.permute.xlu1 %723 }
 0x3ef   :  { %985 = vmatprep.subr.mxu1 %v724_v59 }
 0x3f0   :  { %986 = vmatpush3.msra.mxu1 %v724_v59 }
 0x3f2   :  { %v722_v3 = vpop.permute.xlu1 %721 }
 0x3f3   :  { %987 = vmatprep.subr.mxu1 %v722_v3 }
 0x3f4   :  { %988 = vmatpush3.msra.mxu1 %v722_v3 }
 0x4a6   :  { %v979_v12 = vpop.f32.mrf.mxu0 }
 0x4a7   :  { %1017 = vrcp.f32 %v979_v12 }
 0x4a8   :  { %v660_v13 = vpop.f32.mrf.mxu0 }
 0x4a9   :  { %1019 = vrcp.f32 %v660_v13 }
 0x4aa   :  { %v982_v38 = vpop.f32.mrf.mxu0 }
 0x4ab   :  { %1021 = vrcp.f32 %v982_v38 }
 0x4ac   :  { %v670_v14 = vpop.f32.mrf.mxu0 }
 0x4ad   :  { %1023 = vrcp.f32 %v670_v14 }
 0x4b4   :  { %v1018_v11 = vpop.eup %1017 }
 0x4b5   :  { %v684_v15 = vmul.f32 %v1018_v11, %v979_v12 }
 0x4b6   :  { %v1020_v49 = vpop.eup %1019 }
 0x4b7   :  { %v688_v16 = vsub.f32 2.0, %v684_v15  ;;  %v683_v17 = vmul.f32 %v1020_v49, %v660_v13 }
 0x4b8   :  { %v1022_v45 = vpop.eup %1021 }
 0x4b9   :  { %v687_v18 = vsub.f32 2.0, %v683_v17  ;;  %v692_v19 = vmul.f32 %v1018_v11, %v688_v16  ;;  %v686_v22 = vmul.f32 %v1022_v45, %v982_v38 }
 0x4ba   :  { %v1024_v20 = vpop.eup %1023 }
 0x4bb   :  { %v685_v21 = vmul.f32 %v1024_v20, %v670_v14  ;;  %701 = vrot.lane.b32.xlu1 %v692_v19, %s1096_s0  ;;  %v691_v24 = vmul.f32 %v1020_v49, %v687_v18  ;;  %v690_v26 = vsub.f32 2.0, %v686_v22 }
 0x4bd   :  { %v689_v23 = vsub.f32 2.0, %v685_v21  ;;  %v694_v37 = vmul.f32 %v1022_v45, %v690_v26 }
 0x4bf   :  { %699 = vrot.lane.b32.xlu1 %v691_v24, %s1096_s0  ;;  %v693_v25 = vmul.f32 %v1024_v20, %v689_v23 }
 0x4c1   :  { %703 = vrot.lane.b32.xlu0 %v693_v25, %s1096_s0 }
 0x4c3   :  { %719 = vrot.lane.b32.xlu1 %v1139_v6, %s1099_s21 }
 0x4c5   :  { %732 = vrot.lane.b32.xlu0 %v1148_v10, %s1099_s21 }
 0x4c7   :  { %705 = vrot.lane.b32.xlu1 %v694_v37, %s1096_s0 }
 0x52d   :  { %v702_v39 = vpop.permute.xlu1 %701 }
 0x52e   :  { %v712_v46 = vmul.f32 %v979_v12, %v702_v39 }
 0x531   :  { %v700_v40 = vpop.permute.xlu1 %699 }
 0x532   :  { %v711_v42 = vmul.f32 %v700_v40, %v660_v13 }
 0x533   :  { %v704_v43 = vpop.permute.xlu0 %703 }
 0x534   :  { %991 = vmatprep.mubr.msk.f32.mxu1 %vm53_vm0, %v711_v42  ;;  %v713_v47 = vmul.f32 %v704_v43, %v670_v14 }
 0x535   :  { %v720_v51 = vpop.permute.xlu1 %719 }
 0x536   :  { %989 = vmatprep.subr.mxu1 %v720_v51 }
 0x537   :  { %990 = vmatpush3.msra.mxu1 %v720_v51  ;;  %v733_v10 = vpop.permute.xlu0 %732 }
 0x538   :  { %992 = vmatmul.mubr.msk.f32.vlgmr.msra.gmra.mxu1 %vm53_vm0, %v712_v46 }
 0x539   :  { %v706_v6 = vpop.permute.xlu1 %705  ;;  %994 = vmatprep.mubr.msk.f32.mxu1 %vm53_vm0, %v713_v47 }
 0x53a   :  { %v714_v48 = vmul.f32 %v982_v38, %v706_v6 }
 0x53c   :  { %995 = vmatmul.mubr.msk.f32.gmra.mxu1 %vm53_vm0, %v714_v48 }
 0x5f8   :  { %v993_v50 = vpop.f32.mrf.mxu1 }
 0x5f9   :  { %v819_v53 = vadd.f32 %v993_v50, %v733_v10 }
 0x5fa   :  { %v813_v55 = vpop.f32.mrf.mxu1 }
 0x5fb   :  { %833 = vst.msk [vmem:[#allocation7 + $0x8] sm:$0xff] %vm53_vm0, %v819_v53  ;;  %v814_v1 = vadd.f32 %v813_v55, %v733_v10 }
 0x5fc   :  { %v996_v2 = vpop.f32.mrf.mxu1 }
 0x5fd   :  { %832 = vst.msk [vmem:[#allocation7] sm:$0xff] %vm53_vm0, %v814_v1  ;;  %v829_v4 = vadd.f32 %v996_v2, %v733_v10 }
 0x5fe   :  { %v823_v57 = vpop.f32.mrf.mxu1 }
 0x5ff   :  { %835 = vst.msk [vmem:[#allocation7 + $0x18] sm:$0xff] %vm53_vm0, %v829_v4  ;;  %v824_v58 = vadd.f32 %v823_v57, %v733_v10 }
 0x601   :  { %834 = vst.msk [vmem:[#allocation7 + $0x10] sm:$0xff] %vm53_vm0, %v824_v58 }
 0x602   :  { %1076 = shalt.err (!%p1073_p0)
}
 0x603   :  { %847 = dma.vmem_to_hbm [thread:$0]  %s842_s23, 512, %s1363_s2, [#allocation4], %s1092_s12, %s1092_s12, %s1093_s13  }
 0x604   :  { %1089 = dma.done.wait [#allocation4], 512  }
 0x605   :  { %1090 = vsyncadd [#allocation4], 4294966784 }
 0x606   :  { %851 = vsyncpa [#allocation3], 1 }
 0x607   :  { %852 = vsyncpa [#allocation6], 1 }
 0x608   :  { %853 = vsyncpa [#allocation4], 1 }

</bundles_post_ra>
